<compile_context>
chip_gen: v7x
topology: tpu7x:2x2x1
jax: 0.10.0
libtpu: 0.0.40
codegen_flags: <defaults>
</compile_context>

<pallas_src>
import functools
import numpy as np
import jax
import jax.numpy as jnp
from jax.experimental import pallas as pl
from jax.experimental.pallas import tpu as pltpu


_NEG_INF = -1e30  # large finite negative: safe even if a fully-masked row ever appears


def _flash_attention_kernel(q_ref, k_ref, v_ref, o_ref,
                            m_ref, l_ref, acc_ref,
                            *, scale, causal, tq, tk, use_bf16_matmul):
    """One (head-group, q-tile, kv-tile) step of online-softmax attention.

    Blocks: q (G, tq, D), k/v (G, tk, D), out (G, tq, D).
    Scratch (resident across the kv axis): m (G,tq,1), l (G,tq,1), acc (G,tq,D), all f32.
    """
    qi = pl.program_id(1)
    ki = pl.program_id(2)
    n_kv = pl.num_programs(2)

    @pl.when(ki == 0)
    def _init():
        m_ref[...] = jnp.full(m_ref.shape, _NEG_INF, dtype=m_ref.dtype)
        l_ref[...] = jnp.zeros(l_ref.shape, dtype=l_ref.dtype)
        acc_ref[...] = jnp.zeros(acc_ref.shape, dtype=acc_ref.dtype)

    def _update():
        q = q_ref[...] * jnp.asarray(scale, q_ref.dtype)     # fold 1/sqrt(D) into q
        k = k_ref[...]
        v = v_ref[...]
        if use_bf16_matmul and q.dtype == jnp.float32:
            q = q.astype(jnp.bfloat16)
            k = k.astype(jnp.bfloat16)
            v = v.astype(jnp.bfloat16)

        # q @ k^T on the MXU: batched NT matmul (contract last dims), no transpose.
        s = jax.lax.dot_general(
            q, k, dimension_numbers=(((2,), (2,)), ((0,), (0,))),
            preferred_element_type=jnp.float32)               # (G, tq, tk) f32

        if causal:
            # Mask generated at (tq, tk) and broadcast over G (cheap VPU iota+compare).
            row = jax.lax.broadcasted_iota(jnp.int32, (tq, tk), 0) + qi * tq
            col = jax.lax.broadcasted_iota(jnp.int32, (tq, tk), 1) + ki * tk
            s = jnp.where((row >= col)[None, :, :], s, _NEG_INF)

        # Online softmax update (all f32).
        m_prev = m_ref[...]
        m_new = jnp.maximum(m_prev, jnp.max(s, axis=-1, keepdims=True))
        alpha = jnp.exp(m_prev - m_new)
        p = jnp.exp(s - m_new)
        l_ref[...] = alpha * l_ref[...] + jnp.sum(p, axis=-1, keepdims=True)
        acc_ref[...] = alpha * acc_ref[...] + jax.lax.dot_general(
            p.astype(v.dtype), v,
            dimension_numbers=(((2,), (1,)), ((0,), (0,))),
            preferred_element_type=jnp.float32)               # (G, tq, D)
        m_ref[...] = m_new

    if causal:
        # Skip kv blocks entirely above the diagonal (fully masked).
        q_end = qi * tq + (tq - 1)
        kv_start = ki * tk
        pl.when(kv_start <= q_end)(_update)
    else:
        _update()

    @pl.when(ki == n_kv - 1)
    def _finalize():
        # Exact division (NOT pl.reciprocal(approx=True)) to match F.softmax numerics.
        o_ref[...] = (acc_ref[...] / l_ref[...]).astype(o_ref.dtype)


def _tpu_info():
    try:
        return pltpu.get_tpu_info()
    except Exception:
        return None


def _vmem_capacity_bytes(info):
    for attr in ("vmem_capacity_bytes", "vmem_bytes", "vmem_capacity"):
        v = getattr(info, attr, None) if info is not None else None
        if isinstance(v, (int, np.integer)) and int(v) > 0:
            return int(v)
    return 64 * 1024 * 1024   # conservative fallback (v7x per-TC physical VMEM)


def _num_tensorcores(info):
    for attr in ("num_cores", "tensorcores_per_chip", "num_tensorcores", "core_count"):
        v = getattr(info, attr, None) if info is not None else None
        if isinstance(v, (int, np.integer)) and int(v) > 0:
            return int(v)
    return 1


def _pick_seq_tile(s, target):
    """Largest tile <= target that divides s and satisfies the sublane (8) rule."""
    if s <= target:
        return s
    for t in range(min(target, s), 7, -1):
        if s % t == 0 and t % 8 == 0:
            return t
    return s   # no legal divisor -> single full-length block


def _choose_group_size(bh, tq, tk, d, itemsize, n_q_blocks, vmem_budget, n_cores):
    """Largest head-group fitting the VMEM budget; on multi-core chips prefer a
    parallel step count that splits evenly across TensorCores."""
    def per_step_bytes(g):
        io = 2 * (2 * g * tq * d * itemsize + 2 * g * tk * d * itemsize)   # dbl-buffered q,o,k,v
        scratch = 2 * g * tq * 128 * 4 + g * tq * d * 4                    # m,l (lane-padded), acc
        tmp = 3 * g * tq * tk * 4                                          # score/p temporaries
        return io + scratch + tmp

    best, best_key = 1, None
    for g in range(1, bh + 1):
        if bh % g:
            continue
        if g > 1 and per_step_bytes(g) > vmem_budget:
            continue
        n_par = (bh // g) * n_q_blocks
        even = 1 if (n_cores < 2 or n_par % n_cores == 0) else 0
        key = (even, g)
        if best_key is None or key > best_key:
            best, best_key = g, key
    return best


def full_attention(q, k, v, *, causal=True, attn_dropout=0.0,
                   decode_step=None, decode_idx=None,
                   group_size=None, q_tile=256, kv_tile=512,
                   use_bf16_matmul=False):
    """Pallas implementation of FullAttention.forward (decode_step=None path)."""
    assert decode_step is None, "incremental decode path not implemented"
    del decode_idx
    assert attn_dropout == 0.0   # p=0.0 -> dropout is a no-op

    B, H = q.shape[0], q.shape[1]
    spatial = q.shape[2:-1]
    D = q.shape[-1]
    S = int(np.prod(spatial))
    BH = B * H

    qf = q.reshape(BH, S, D)
    kf = k.reshape(BH, S, D)
    vf = v.reshape(BH, S, D)

    tq = _pick_seq_tile(S, q_tile)
    tk = _pick_seq_tile(S, kv_tile)
    n_q = S // tq
    n_kv = S // tk

    # Generation-aware VMEM budgeting (~24 MiB on v7x, up to 48 MiB on v5e/v6e).
    info = _tpu_info()
    vmem_cap = _vmem_capacity_bytes(info)
    n_cores = _num_tensorcores(info)
    vmem_budget = min(int(vmem_cap * 0.375), 48 * 1024 * 1024)
    vmem_limit = max(vmem_budget, min(int(vmem_cap * 0.5), 64 * 1024 * 1024))

    itemsize = np.dtype(q.dtype).itemsize
    G = group_size if group_size is not None else _choose_group_size(
        BH, tq, tk, D, itemsize, n_q, vmem_budget, n_cores)
    assert BH % G == 0, "group_size must divide B*H"
    n_groups = BH // G

    scale = 1.0 / float(np.sqrt(D))
    kernel = functools.partial(_flash_attention_kernel, scale=scale, causal=causal,
                               tq=tq, tk=tk, use_bf16_matmul=use_bf16_matmul)

    out = pl.pallas_call(
        kernel,
        out_shape=jax.ShapeDtypeStruct((BH, S, D), q.dtype),
        grid_spec=pltpu.PrefetchScalarGridSpec(
            num_scalar_prefetch=0,
            grid=(n_groups, n_q, n_kv),
            in_specs=[
                pl.BlockSpec((G, tq, D), lambda g, qi, ki: (g, qi, 0)),
                pl.BlockSpec((G, tk, D), lambda g, qi, ki: (g, ki, 0)),
                pl.BlockSpec((G, tk, D), lambda g, qi, ki: (g, ki, 0)),
            ],
            out_specs=pl.BlockSpec((G, tq, D), lambda g, qi, ki: (g, qi, 0)),
            scratch_shapes=[
                pltpu.VMEM((G, tq, 1), jnp.float32),   # running max m
                pltpu.VMEM((G, tq, 1), jnp.float32),   # running denom l
                pltpu.VMEM((G, tq, D), jnp.float32),   # output accumulator
            ]),
        compiler_params=pltpu.CompilerParams(
            dimension_semantics=("parallel", "parallel", "arbitrary"),
            vmem_limit_bytes=vmem_limit),
    )(qf, kf, vf)

    return out.reshape((B, H) + spatial + (D,))


def _reference(q, k, v, causal=True):
    B, H = q.shape[0], q.shape[1]
    spatial = q.shape[2:-1]
    D = q.shape[-1]
    S = int(np.prod(spatial))
    qf = q.reshape(B, H, S, D).astype(jnp.float32)
    kf = k.reshape(B, H, S, D).astype(jnp.float32)
    vf = v.reshape(B, H, S, D).astype(jnp.float32)
    attn = jnp.einsum("bhsd,bhtd->bhst", qf, kf,
                      precision=jax.lax.Precision.HIGHEST) / np.sqrt(D)
    if causal:
        mask = jnp.tril(jnp.ones((S, S), dtype=jnp.float32))
        attn = jnp.where(mask == 0, -jnp.inf, attn)
    attn = jax.nn.softmax(attn, axis=-1)
    out = jnp.einsum("bhst,bhtd->bhsd", attn, vf,
                     precision=jax.lax.Precision.HIGHEST)
    return out.reshape((B, H) + spatial + (D,)).astype(q.dtype)


if __name__ == "__main__":
    # FullAttention(shape=(4, 4), causal=True, attn_dropout=0.0)
    # q, k, v: (batch=2, heads=2, 4, 4, d=32) -> seq_len = 16
    B, H, D = 2, 2, 32
    shape = (4, 4)

    key = jax.random.PRNGKey(0)
    kq, kk, kv = jax.random.split(key, 3)
    q = jax.random.normal(kq, (B, H) + shape + (D,), dtype=jnp.float32)
    k = jax.random.normal(kk, (B, H) + shape + (D,), dtype=jnp.float32)
    v = jax.random.normal(kv, (B, H) + shape + (D,), dtype=jnp.float32)

    # Causal path (auto head-group size, single q/kv tile at S=16).
    out = jax.block_until_ready(
        full_attention(q, k, v, causal=True, attn_dropout=0.0,
                       decode_step=None, decode_idx=None))
    ref = _reference(q, k, v, causal=True)
    np.testing.assert_allclose(np.asarray(out), np.asarray(ref),
                               rtol=2e-3, atol=2e-3)
    assert out.shape == (B, H) + shape + (D,)

    # Non-causal path with an explicit smaller head group.
    out2 = jax.block_until_ready(
        full_attention(q, k, v, causal=False, attn_dropout=0.0,
                       decode_step=None, decode_idx=None, group_size=2))
    ref2 = _reference(q, k, v, causal=False)
    np.testing.assert_allclose(np.asarray(out2), np.asarray(ref2),
                               rtol=2e-3, atol=2e-3)

    # Multi-tile flash path: S=64 split into 2 q-tiles x 2 kv-tiles exercises the
    # online-softmax carry and the causal kv-block skip.
    B3, H3 = 1, 2
    shape3 = (8, 8)
    k3q, k3k, k3v = jax.random.split(jax.random.PRNGKey(1), 3)
    q3 = jax.random.normal(k3q, (B3, H3) + shape3 + (D,), dtype=jnp.float32)
    k3 = jax.random.normal(k3k, (B3, H3) + shape3 + (D,), dtype=jnp.float32)
    v3 = jax.random.normal(k3v, (B3, H3) + shape3 + (D,), dtype=jnp.float32)
    out3 = jax.block_until_ready(
        full_attention(q3, k3, v3, causal=True, attn_dropout=0.0,
                       decode_step=None, decode_idx=None,
                       q_tile=32, kv_tile=32))
    ref3 = _reference(q3, k3, v3, causal=True)
    np.testing.assert_allclose(np.asarray(out3), np.asarray(ref3),
                               rtol=2e-3, atol=2e-3)

    print("KERNEL_OK")
</pallas_src>

<mosaic_0001>
module attributes {stable_mosaic.version = 11 : i64} {
  func.func @_flash_attention_kernel(%arg0: i32, %arg1: i32, %arg2: i32, %arg3: memref<4x16x32xf32, #tpu.memory_space<vmem>>, %arg4: memref<4x16x32xf32, #tpu.memory_space<vmem>>, %arg5: memref<4x16x32xf32, #tpu.memory_space<vmem>>, %arg6: memref<4x16x32xf32, #tpu.memory_space<vmem>>, %arg7: memref<4x16x1xf32, #tpu.memory_space<vmem>>, %arg8: memref<4x16x1xf32, #tpu.memory_space<vmem>>, %arg9: memref<4x16x32xf32, #tpu.memory_space<vmem>>) attributes {dimension_semantics = [#tpu.dimension_semantics<parallel>, #tpu.dimension_semantics<parallel>, #tpu.dimension_semantics<arbitrary>], iteration_bounds = array<i64: 1, 1, 1>, scalar_prefetch = 0 : i64, scratch_operands = 3 : i64, tpu.core_type = #tpu.core_type<tc>, window_params = [{transform_indices = @transform_0, window_bounds = array<i64: 4, 16, 32>}, {transform_indices = @transform_1, window_bounds = array<i64: 4, 16, 32>}, {transform_indices = @transform_2, window_bounds = array<i64: 4, 16, 32>}, {transform_indices = @transform_3, window_bounds = array<i64: 4, 16, 32>}]} {
    %c0_i32 = arith.constant 0 : i32
    %0 = arith.cmpi eq, %arg2, %c0_i32 : i32
    %1 = arith.extui %0 : i1 to i32
    %c0_i32_0 = arith.constant 0 : i32
    %2 = arith.cmpi ne, %1, %c0_i32_0 : i32
    scf.if %2 {
      %cst = arith.constant -1.000000e+30 : f32
      %12 = vector.broadcast %cst : f32 to vector<4x16x1xf32>
      %c0 = arith.constant 0 : index
      %c0_5 = arith.constant 0 : index
      %c0_6 = arith.constant 0 : index
      %13 = vector.load %arg7[%c0, %c0_5, %c0_6] : memref<4x16x1xf32, #tpu.memory_space<vmem>>, vector<4x16x1xf32>
      tpu.vector_store %arg7[%c0, %c0_5, %c0_6], %12 {strides = array<i32>} : memref<4x16x1xf32, #tpu.memory_space<vmem>>, vector<4x16x1xf32>,
      %cst_7 = arith.constant 0.000000e+00 : f32
      %14 = vector.broadcast %cst_7 : f32 to vector<4x16x1xf32>
      %c0_8 = arith.constant 0 : index
      %c0_9 = arith.constant 0 : index
      %c0_10 = arith.constant 0 : index
      %15 = vector.load %arg8[%c0_8, %c0_9, %c0_10] : memref<4x16x1xf32, #tpu.memory_space<vmem>>, vector<4x16x1xf32>
      tpu.vector_store %arg8[%c0_8, %c0_9, %c0_10], %14 {strides = array<i32>} : memref<4x16x1xf32, #tpu.memory_space<vmem>>, vector<4x16x1xf32>,
      %cst_11 = arith.constant 0.000000e+00 : f32
      %16 = vector.broadcast %cst_11 : f32 to vector<4x16x32xf32>
      %c0_12 = arith.constant 0 : index
      %c0_13 = arith.constant 0 : index
      %c0_14 = arith.constant 0 : index
      %17 = vector.load %arg9[%c0_12, %c0_13, %c0_14] : memref<4x16x32xf32, #tpu.memory_space<vmem>>, vector<4x16x32xf32>
      tpu.vector_store %arg9[%c0_12, %c0_13, %c0_14], %16 {strides = array<i32>} : memref<4x16x32xf32, #tpu.memory_space<vmem>>, vector<4x16x32xf32>,
    } else {
    }
    %c16_i32 = arith.constant 16 : i32
    %3 = arith.muli %arg1, %c16_i32 : i32
    %c15_i32 = arith.constant 15 : i32
    %4 = arith.addi %3, %c15_i32 : i32
    %c16_i32_1 = arith.constant 16 : i32
    %5 = arith.muli %arg2, %c16_i32_1 : i32
    %6 = arith.cmpi sle, %5, %4 : i32
    %7 = arith.extui %6 : i1 to i32
    %c0_i32_2 = arith.constant 0 : i32
    %8 = arith.cmpi ne, %7, %c0_i32_2 : i32
    scf.if %8 {
      %c0 = arith.constant 0 : index
      %c0_5 = arith.constant 0 : index
      %c0_6 = arith.constant 0 : index
      %12 = vector.load %arg3[%c0, %c0_5, %c0_6] : memref<4x16x32xf32, #tpu.memory_space<vmem>>, vector<4x16x32xf32>
      %cst = arith.constant 0.176776692 : f32
      %13 = vector.broadcast %cst : f32 to vector<4x16x32xf32>
      %14 = arith.mulf %12, %13 : vector<4x16x32xf32>
      %c0_7 = arith.constant 0 : index
      %c0_8 = arith.constant 0 : index
      %c0_9 = arith.constant 0 : index
      %15 = vector.load %arg4[%c0_7, %c0_8, %c0_9] : memref<4x16x32xf32, #tpu.memory_space<vmem>>, vector<4x16x32xf32>
      %c0_10 = arith.constant 0 : index
      %c0_11 = arith.constant 0 : index
      %c0_12 = arith.constant 0 : index
      %16 = vector.load %arg5[%c0_10, %c0_11, %c0_12] : memref<4x16x32xf32, #tpu.memory_space<vmem>>, vector<4x16x32xf32>
      %cst_13 = arith.constant dense<0.000000e+00> : vector<4x16x16xf32>
      %17 = tpu.matmul %14, %15, %cst_13 {dimension_numbers = #tpu.dot_dimension_numbers<[2], [2], [1], [1], [0, 0, 0, 1, 1, 1], [0], [0]>} : vector<4x16x32xf32>, vector<4x16x32xf32>, vector<4x16x16xf32> -> vector<4x16x16xf32>
      %18 = tpu.iota {dimensions = array<i32: 0>} : vector<16x16xi32>
      %c16_i32_14 = arith.constant 16 : i32
      %19 = arith.muli %arg1, %c16_i32_14 : i32
      %20 = vector.broadcast %19 : i32 to vector<16x16xi32>
      %21 = arith.addi %18, %20 : vector<16x16xi32>
      %22 = tpu.iota {dimensions = array<i32: 1>} : vector<16x16xi32>
      %c16_i32_15 = arith.constant 16 : i32
      %23 = arith.muli %arg2, %c16_i32_15 : i32
      %24 = vector.broadcast %23 : i32 to vector<16x16xi32>
      %25 = arith.addi %22, %24 : vector<16x16xi32>
      %26 = arith.cmpi sge, %21, %25 : vector<16x16xi32>
      %27 = vector.shape_cast %26 : vector<16x16xi1> to vector<1x16x16xi1>
      %cst_16 = arith.constant -1.000000e+30 : f32
      %28 = vector.shape_cast %27 : vector<1x16x16xi1> to vector<1x16x16xi1>
      %29 = vector.broadcast %28 : vector<1x16x16xi1> to vector<4x16x16xi1>
      %30 = vector.broadcast %cst_16 : f32 to vector<4x16x16xf32>
      %31 = arith.select %29, %17, %30 : vector<4x16x16xi1>, vector<4x16x16xf32>
      %c0_17 = arith.constant 0 : index
      %c0_18 = arith.constant 0 : index
      %c0_19 = arith.constant 0 : index
      %32 = vector.load %arg7[%c0_17, %c0_18, %c0_19] : memref<4x16x1xf32, #tpu.memory_space<vmem>>, vector<4x16x1xf32>
      %cst_20 = arith.constant dense<0xFF800000> : vector<4x16xf32>
      %33 = vector.multi_reduction <maximumf>, %31, %cst_20 [2] : vector<4x16x16xf32> to vector<4x16xf32>
      %34 = vector.shape_cast %33 : vector<4x16xf32> to vector<4x16x1xf32>
      %35 = arith.maximumf %32, %34 : vector<4x16x1xf32>
      %36 = arith.subf %32, %35 : vector<4x16x1xf32>
      %37 = math.exp %36 : vector<4x16x1xf32>
      %38 = vector.broadcast %35 : vector<4x16x1xf32> to vector<4x16x16xf32>
      %39 = arith.subf %31, %38 : vector<4x16x16xf32>
      %40 = math.exp %39 : vector<4x16x16xf32>
      %c0_21 = arith.constant 0 : index
      %c0_22 = arith.constant 0 : index
      %c0_23 = arith.constant 0 : index
      %41 = vector.load %arg8[%c0_21, %c0_22, %c0_23] : memref<4x16x1xf32, #tpu.memory_space<vmem>>, vector<4x16x1xf32>
      %42 = arith.mulf %37, %41 : vector<4x16x1xf32>
      %cst_24 = arith.constant dense<0.000000e+00> : vector<4x16xf32>
      %43 = vector.multi_reduction <add>, %40, %cst_24 [2] : vector<4x16x16xf32> to vector<4x16xf32>
      %44 = vector.shape_cast %43 : vector<4x16xf32> to vector<4x16x1xf32>
      %45 = arith.addf %42, %44 : vector<4x16x1xf32>
      %c0_25 = arith.constant 0 : index
      %c0_26 = arith.constant 0 : index
      %c0_27 = arith.constant 0 : index
      %46 = vector.load %arg8[%c0_25, %c0_26, %c0_27] : memref<4x16x1xf32, #tpu.memory_space<vmem>>, vector<4x16x1xf32>
      tpu.vector_store %arg8[%c0_25, %c0_26, %c0_27], %45 {strides = array<i32>} : memref<4x16x1xf32, #tpu.memory_space<vmem>>, vector<4x16x1xf32>,
      %c0_28 = arith.constant 0 : index
      %c0_29 = arith.constant 0 : index
      %c0_30 = arith.constant 0 : index
      %47 = vector.load %arg9[%c0_28, %c0_29, %c0_30] : memref<4x16x32xf32, #tpu.memory_space<vmem>>, vector<4x16x32xf32>
      %48 = vector.broadcast %37 : vector<4x16x1xf32> to vector<4x16x32xf32>
      %49 = arith.mulf %48, %47 : vector<4x16x32xf32>
      %cst_31 = arith.constant dense<0.000000e+00> : vector<4x16x32xf32>
      %50 = tpu.matmul %40, %16, %cst_31 {dimension_numbers = #tpu.dot_dimension_numbers<[2], [1], [1], [2], [0, 0, 0, 1, 1, 2], [0], [0]>} : vector<4x16x16xf32>, vector<4x16x32xf32>, vector<4x16x32xf32> -> vector<4x16x32xf32>
      %51 = arith.addf %49, %50 : vector<4x16x32xf32>
      %c0_32 = arith.constant 0 : index
      %c0_33 = arith.constant 0 : index
      %c0_34 = arith.constant 0 : index
      %52 = vector.load %arg9[%c0_32, %c0_33, %c0_34] : memref<4x16x32xf32, #tpu.memory_space<vmem>>, vector<4x16x32xf32>
      tpu.vector_store %arg9[%c0_32, %c0_33, %c0_34], %51 {strides = array<i32>} : memref<4x16x32xf32, #tpu.memory_space<vmem>>, vector<4x16x32xf32>,
      %c0_35 = arith.constant 0 : index
      %c0_36 = arith.constant 0 : index
      %c0_37 = arith.constant 0 : index
      %53 = vector.load %arg7[%c0_35, %c0_36, %c0_37] : memref<4x16x1xf32, #tpu.memory_space<vmem>>, vector<4x16x1xf32>
      tpu.vector_store %arg7[%c0_35, %c0_36, %c0_37], %35 {strides = array<i32>} : memref<4x16x1xf32, #tpu.memory_space<vmem>>, vector<4x16x1xf32>,
    } else {
    }
    %c0_i32_3 = arith.constant 0 : i32
    %9 = arith.cmpi eq, %arg2, %c0_i32_3 : i32
    %10 = arith.extui %9 : i1 to i32
    %c0_i32_4 = arith.constant 0 : i32
    %11 = arith.cmpi ne, %10, %c0_i32_4 : i32
    scf.if %11 {
      %c0 = arith.constant 0 : index
      %c0_5 = arith.constant 0 : index
      %c0_6 = arith.constant 0 : index
      %12 = vector.load %arg9[%c0, %c0_5, %c0_6] : memref<4x16x32xf32, #tpu.memory_space<vmem>>, vector<4x16x32xf32>
      %c0_7 = arith.constant 0 : index
      %c0_8 = arith.constant 0 : index
      %c0_9 = arith.constant 0 : index
      %13 = vector.load %arg8[%c0_7, %c0_8, %c0_9] : memref<4x16x1xf32, #tpu.memory_space<vmem>>, vector<4x16x1xf32>
      %14 = vector.broadcast %13 : vector<4x16x1xf32> to vector<4x16x32xf32>
      %15 = arith.divf %12, %14 : vector<4x16x32xf32>
      %c0_10 = arith.constant 0 : index
      %c0_11 = arith.constant 0 : index
      %c0_12 = arith.constant 0 : index
      %16 = vector.load %arg6[%c0_10, %c0_11, %c0_12] : memref<4x16x32xf32, #tpu.memory_space<vmem>>, vector<4x16x32xf32>
      tpu.vector_store %arg6[%c0_10, %c0_11, %c0_12], %15 {strides = array<i32>} : memref<4x16x32xf32, #tpu.memory_space<vmem>>, vector<4x16x32xf32>,
    } else {
    }
    return
  }
  func.func @transform_0(%arg0: i32, %arg1: i32, %arg2: i32) -> (i32, i32, i32) {
    %c0_i32 = arith.constant 0 : i32
    %c0_i32_0 = arith.constant 0 : i32
    return %arg0, %arg1, %c0_i32 : i32, i32, i32
  }
  func.func @transform_1(%arg0: i32, %arg1: i32, %arg2: i32) -> (i32, i32, i32) {
    %c0_i32 = arith.constant 0 : i32
    %c0_i32_0 = arith.constant 0 : i32
    return %arg0, %arg2, %c0_i32 : i32, i32, i32
  }
  func.func @transform_2(%arg0: i32, %arg1: i32, %arg2: i32) -> (i32, i32, i32) {
    %c0_i32 = arith.constant 0 : i32
    %c0_i32_0 = arith.constant 0 : i32
    return %arg0, %arg2, %c0_i32 : i32, i32, i32
  }
  func.func @transform_3(%arg0: i32, %arg1: i32, %arg2: i32) -> (i32, i32, i32) {
    %c0_i32 = arith.constant 0 : i32
    %c0_i32_0 = arith.constant 0 : i32
    return %arg0, %arg1, %c0_i32 : i32, i32, i32
  }
}

</mosaic_0001>

<bundles_post_ra>
// kernel: tpu_custom_call.1
= control target key start
LH: loop header
LB: loop body
LE: loop exit
PB: predicated region body
PF: predicated region fallthrough
CT: control target
= control target key end

     0   :  { %8 = vsyncpa [#allocation6], 0  ;;  %s1837_s0 = inlined_call_operand.hbm [shape: f32[4,16,32], index: 0, kind: input, shape index: {}]   ;;  %s1838_s1 = inlined_call_operand.hbm [shape: f32[4,16,32], index: 1, kind: input, shape index: {}]   ;;  %s1839_s2 = inlined_call_operand.hbm [shape: f32[4,16,32], index: 2, kind: input, shape index: {}]   ;;  %s1840_s3 = inlined_call_operand.hbm [shape: f32[4,16,32], index: 3, kind: output, shape index: {}]  }
   0x1   :  { %9 = vsyncpa [#allocation9], 0 }
   0x2   :  { %10 = vsyncpa [#allocation7], 0  ;;  %s1495_s12 = smov [#allocation8]   ;;  %s1496_s14 = smov [#allocation5]  }
   0x3   :  { %s28_s13 = sshll.u32 %s1495_s12, 4  ;;  %s16_s15 = sshll.u32 %s1496_s14, 4  ;;  %s29_s13 = int_to_ptr.vmem [resolvable:$true] %s28_s13  ;;  %s1524_s15 = int_to_ptr.vmem [resolvable:$true] %s16_s15 }
   0x4   :  { %s1401_s18 = scalar_lea.hbm %s1838_s1, 1024 }
   0x5   :  { %p1402_p0 = scmp.ne.s32.totalorder %s1838_s1, %s1401_s18  ;;  %p1405_p1 = scmp.lt.u32.totalorder %s1401_s18, %s1838_s1 }
   0x7   :  { %p1407_p2 = pnand %p1405_p1, %p1402_p0 }
   0x9   :  { %1410 = shalt.err (!%p1407_p2)
}
   0xa   :  { %s1411_s23 = scalar_lea.vmem %s29_s13, 1024  ;;  %p1416_p4 = scmp.lt.s32.totalorder %s29_s13, %s29_s13 }
   0xb   :  { %p1412_p3 = scmp.ne.s32.totalorder %s29_s13, %s1411_s23  ;;  %p1417_p5 = scmp.lt.s32.totalorder %s1411_s23, %s1411_s23 }
   0xd   :  { %p1418_p6 = por %p1417_p5, %p1416_p4 }
   0xf   :  { %p1419_p7 = pnand %p1418_p6, %p1412_p3 }
  0x11   :  { %1422 = shalt.err (!%p1419_p7)
}
  0x12   :  { %s1497_s24 = smov 128   ;;  %s1498_s25 = smov 8  }
  0x13   :  { %34 = dma.hbm_to_vmem [thread:$0]  %s1838_s1, 1024, %s29_s13, [#allocation9], %s1497_s24, %s1497_s24, %s1498_s25  }
  0x14   :  { %s1423_s30 = scalar_lea.hbm %s1837_s0, 1024 }
  0x15   :  { %p1424_p8 = scmp.ne.s32.totalorder %s1837_s0, %s1423_s30  ;;  %p1427_p9 = scmp.lt.u32.totalorder %s1423_s30, %s1837_s0 }
  0x17   :  { %p1429_p10 = pnand %p1427_p9, %p1424_p8 }
  0x19   :  { %1432 = shalt.err (!%p1429_p10)
}
  0x1a   :  { %s1433_s8 = scalar_lea.vmem %s1524_s15, 1024  ;;  %p1438_p12 = scmp.lt.s32.totalorder %s1524_s15, %s1524_s15 }
  0x1b   :  { %p1434_p11 = scmp.ne.s32.totalorder %s1524_s15, %s1433_s8  ;;  %p1439_p13 = scmp.lt.s32.totalorder %s1433_s8, %s1433_s8 }
  0x1d   :  { %p1440_p0 = por %p1439_p13, %p1438_p12 }
  0x1f   :  { %p1441_p1 = pnand %p1440_p0, %p1434_p11 }
  0x21   :  { %1444 = shalt.err (!%p1441_p1)
}
  0x22   :  { %22 = dma.hbm_to_vmem [thread:$0]  %s1837_s0, 1024, %s1524_s15, [#allocation6], %s1497_s24, %s1497_s24, %s1498_s25  }
  0x23   :  { %s1499_s10 = smov [#allocation10]   ;;  %s1445_s14 = scalar_lea.hbm %s1839_s2, 1024 }
  0x24   :  { %s40_s11 = sshll.u32 %s1499_s10, 4  ;;  %p1446_p2 = scmp.ne.s32.totalorder %s1839_s2, %s1445_s14  ;;  %s41_s11 = int_to_ptr.vmem [resolvable:$true] %s40_s11 }
  0x25   :  { %p1449_p3 = scmp.lt.u32.totalorder %s1445_s14, %s1839_s2 }
  0x27   :  { %p1451_p4 = pnand %p1449_p3, %p1446_p2 }
  0x29   :  { %1454 = shalt.err (!%p1451_p4)
}
  0x2a   :  { %s1455_s20 = scalar_lea.vmem %s41_s11, 1024  ;;  %p1460_p6 = scmp.lt.s32.totalorder %s41_s11, %s41_s11 }
  0x2b   :  { %p1456_p5 = scmp.ne.s32.totalorder %s41_s11, %s1455_s20  ;;  %p1461_p7 = scmp.lt.s32.totalorder %s1455_s20, %s1455_s20 }
  0x2d   :  { %p1462_p8 = por %p1461_p7, %p1460_p6 }
  0x2f   :  { %p1463_p9 = pnand %p1462_p8, %p1456_p5 }
  0x31   :  { %1466 = shalt.err (!%p1463_p9)
}
  0x32   :  { %46 = dma.hbm_to_vmem [thread:$0]  %s1839_s2, 1024, %s41_s11, [#allocation9], %s1497_s24, %s1497_s24, %s1498_s25  }
  0x33   :  { %1489 = dma.done.wait [#allocation6], 1024  }
  0x34   :  { %1490 = vsyncadd [#allocation6], 4294966272 }
  0x35   :  { %1491 = dma.done.wait [#allocation9], 2048  }
  0x36   :  { %1492 = vsyncadd [#allocation9], 4294965248  ;;  %vm77_vm0 = vcmask 261120   ;;  %v109_v1 = vld [vmem:[#allocation8] sm:$0xff]  ;;  %v110_v2 = vld [vmem:[#allocation8 + $0x8] sm:$0xff]  ;;  %vm60_vm2 = vcmask 7168   ;;  %v474_v30 = vlaneseq }
  0x37   :  { %vm1578_vm1 = vmpackc.low %vm77_vm0, %vm77_vm0  ;;  %v111_v3 = vld [vmem:[#allocation8 + $0x10] sm:$0xff]  ;;  %v1302_v4 = vpack.c.bf16 %v110_v2, %v109_v1  ;;  %v112_v5 = vld [vmem:[#allocation8 + $0x18] sm:$0xff]  ;;  %v1500_v29 = vmov -1e+30   ;;  %vm506_vm5 = vcmask 130048   ;;  %v1501_v58 = vmov 0  }
  0x38   :  { %v93_v6 = vld [vmem:[#allocation5] sm:$0xff]  ;;  %v1308_v7 = vpack.c.bf16 %v112_v5, %v111_v3  ;;  %v114_v10 = vld [vmem:[#allocation8 + $0x28] sm:$0xff]  ;;  %v95_v12 = vld [vmem:[#allocation5 + $0x10] sm:$0xff]  ;;  %62 = vst.msk [vmem:[#allocation2 + $0x8] sm:$0xff] %vm60_vm2, %v1500_v29  ;;  %v475_v31 = vshrl.u32 %v474_v30, 7  ;;  %v481_v33 = vand.u32 127, %v474_v30  ;;  %1352 = vset.pattern.permute.xlu1 %v1501_v58  ;;  %1351 = vset.pattern.permute.xlu0 %v1501_v58 }
  0x39   :  { %v101_v8 = vmul.f32 0.17677669, %v93_v6  ;;  %v113_v9 = vld [vmem:[#allocation8 + $0x20] sm:$0xff]  ;;  %1304 = vmatprep.subr.msk.bf16.mxu0 %vm1578_vm1, %v1302_v4  ;;  %v94_v13 = vld [vmem:[#allocation5 + $0x8] sm:$0xff]  ;;  %v103_v14 = vmul.f32 0.17677669, %v95_v12 }
  0x3a   :  { %v1314_v11 = vpack.c.bf16 %v114_v10, %v113_v9  ;;  %1307 = vmatpush3.bf16.xpose.msk.msra.mxu0 %vm1578_vm1, %v1302_v4  ;;  %1310 = vmatprep.subr.msk.bf16.mxu1 %vm1578_vm1, %v1308_v7  ;;  %v96_v15 = vld [vmem:[#allocation5 + $0x18] sm:$0xff]  ;;  %v115_v16 = vld [vmem:[#allocation8 + $0x30] sm:$0xff]  ;;  %v97_v18 = vld [vmem:[#allocation5 + $0x20] sm:$0xff]  ;;  %v102_v20 = vmul.f32 0.17677669, %v94_v13  ;;  %61 = vst.msk [vmem:[#allocation2] sm:$0xff] %vm60_vm2, %v1500_v29  ;;  %vm484_vm4 = vcmp.ge.s32.totalorder %v475_v31, %v481_v33 }
  0x3b   :  { %1313 = vmatpush3.bf16.xpose.msk.msra.mxu1 %vm1578_vm1, %v1308_v7  ;;  %1250 = vmatprep.mubr.msk.f32.mxu0 %vm77_vm0, %v101_v8  ;;  %v116_v17 = vld [vmem:[#allocation8 + $0x38] sm:$0xff]  ;;  %v99_v21 = vld [vmem:[#allocation5 + $0x30] sm:$0xff]  ;;  %v104_v22 = vmul.f32 0.17677669, %v96_v15  ;;  %v105_v23 = vmul.f32 0.17677669, %v97_v18 }
  0x3c   :  { %1316 = vmatprep.subr.msk.bf16.mxu0 %vm1578_vm1, %v1314_v11  ;;  %1257 = vmatprep.mubr.msk.f32.mxu1 %vm77_vm0, %v103_v14  ;;  %v1320_v19 = vpack.c.bf16 %v116_v17, %v115_v16  ;;  %v107_v24 = vmul.f32 0.17677669, %v99_v21  ;;  %v98_v25 = vld [vmem:[#allocation5 + $0x28] sm:$0xff]  ;;  %v100_v26 = vld [vmem:[#allocation5 + $0x38] sm:$0xff]  ;;  %63 = vst.msk [vmem:[#allocation2 + $0x10] sm:$0xff] %vm60_vm2, %v1500_v29  ;;  %64 = vst.msk [vmem:[#allocation2 + $0x18] sm:$0xff] %vm60_vm2, %v1500_v29 }
  0x3d   :  { %v106_v27 = vmul.f32 0.17677669, %v98_v25  ;;  %v108_v28 = vmul.f32 0.17677669, %v100_v26  ;;  %65 = vst.msk [vmem:[#allocation2 + $0x20] sm:$0xff] %vm60_vm2, %v1500_v29  ;;  %66 = vst.msk [vmem:[#allocation2 + $0x28] sm:$0xff] %vm60_vm2, %v1500_v29 }
  0x3e   :  { %1322 = vmatprep.subr.msk.bf16.mxu1 %vm1578_vm1, %v1320_v19  ;;  %67 = vst.msk [vmem:[#allocation2 + $0x30] sm:$0xff] %vm60_vm2, %v1500_v29  ;;  %68 = vst.msk [vmem:[#allocation2 + $0x38] sm:$0xff] %vm60_vm2, %v1500_v29  ;;  %v476_v32 = vadd.s32 8, %v475_v31  ;;  %v1502_v59 = vmov 0.0   ;;  %v119_v31 = vld [vmem:[#allocation10 + $0x10] sm:$0xff]  ;;  %s1503_s2 = smov [#allocation11]  }
  0x3f   :  { %70 = vst.msk [vmem:[#allocation3 + $0x8] sm:$0xff] %vm60_vm2, %v1502_v59  ;;  %69 = vst.msk [vmem:[#allocation3] sm:$0xff] %vm60_vm2, %v1502_v59  ;;  %v1670_v60 = vld [vmem:[#allocation2 + $0x8] sm:$0xff]  ;;  %s1177_s21 = sshll.u32 %s1503_s2, 4  ;;  %s1178_s21 = int_to_ptr.vmem [resolvable:$true] %s1177_s21 }
  0x40   :  { %vm485_vm3 = vcmp.ge.s32.totalorder %v476_v32, %v481_v33  ;;  %71 = vst.msk [vmem:[#allocation3 + $0x10] sm:$0xff] %vm60_vm2, %v1502_v59  ;;  %72 = vst.msk [vmem:[#allocation3 + $0x18] sm:$0xff] %vm60_vm2, %v1502_v59  ;;  %v120_v32 = vld [vmem:[#allocation10 + $0x18] sm:$0xff]  ;;  %s1467_s22 = scalar_lea.vmem %s1178_s21, 1024  ;;  %p1472_p11 = scmp.lt.s32.totalorder %s1178_s21, %s1178_s21 }
  0x41   :  { %1251 = vmatmul.mubr.msk.f32.vlgmr.msra.gmra.mrb[0].mxu0 %vm77_vm0, %v102_v20  ;;  %73 = vst.msk [vmem:[#allocation3 + $0x20] sm:$0xff] %vm60_vm2, %v1502_v59  ;;  %74 = vst.msk [vmem:[#allocation3 + $0x28] sm:$0xff] %vm60_vm2, %v1502_v59  ;;  %v1672_v61 = vld [vmem:[#allocation2] sm:$0xff]  ;;  %v1330_v33 = vpack.c.bf16 %v120_v32, %v119_v31  ;;  %p1468_p10 = scmp.ne.s32.totalorder %s1178_s21, %s1467_s22  ;;  %p1473_p12 = scmp.lt.s32.totalorder %s1467_s22, %s1467_s22 }
  0x42   :  { %1319 = vmatpush3.bf16.xpose.msk.msra.mxu0 %vm1578_vm1, %v1314_v11  ;;  %1258 = vmatmul.mubr.msk.f32.vlgmr.msra.gmra.mrb[0].mxu1 %vm77_vm0, %v104_v22  ;;  %75 = vst.msk [vmem:[#allocation3 + $0x30] sm:$0xff] %vm60_vm2, %v1502_v59  ;;  %76 = vst.msk [vmem:[#allocation3 + $0x38] sm:$0xff] %vm60_vm2, %v1502_v59 }
  0x43   :  { %1264 = vmatprep.mubr.msk.f32.mxu0 %vm77_vm0, %v105_v23  ;;  %1325 = vmatpush3.bf16.xpose.msk.msra.mxu1 %vm1578_vm1, %v1320_v19  ;;  %78 = vst.msk [vmem:[#allocation4] sm:$0xff] %vm77_vm0, %v1502_v59  ;;  %79 = vst.msk [vmem:[#allocation4 + $0x8] sm:$0xff] %vm77_vm0, %v1502_v59  ;;  %v1680_v2 = vld [vmem:[#allocation2 + $0x18] sm:$0xff]  ;;  %v1687_v4 = vld [vmem:[#allocation2 + $0x10] sm:$0xff]  ;;  %p1474_p13 = por %p1473_p12, %p1472_p11 }
  0x44   :  { %1271 = vmatprep.mubr.msk.f32.mxu1 %vm77_vm0, %v107_v24  ;;  %80 = vst.msk [vmem:[#allocation4 + $0x10] sm:$0xff] %vm77_vm0, %v1502_v59  ;;  %81 = vst.msk [vmem:[#allocation4 + $0x18] sm:$0xff] %vm77_vm0, %v1502_v59  ;;  %v1705_v11 = vld [vmem:[#allocation2 + $0x20] sm:$0xff]  ;;  %v1717_v17 = vld [vmem:[#allocation2 + $0x28] sm:$0xff]  ;;  %1331 = vmatprep.subr.bf16.mxu1 %v1330_v33 }
  0x45   :  { %82 = vst.msk [vmem:[#allocation4 + $0x20] sm:$0xff] %vm77_vm0, %v1502_v59  ;;  %83 = vst.msk [vmem:[#allocation4 + $0x28] sm:$0xff] %vm77_vm0, %v1502_v59  ;;  %v1711_v13 = vld [vmem:[#allocation2 + $0x30] sm:$0xff]  ;;  %v1726_v20 = vld [vmem:[#allocation2 + $0x38] sm:$0xff]  ;;  %p1475_p0 = pnand %p1474_p13, %p1468_p10 }
  0x46   :  { %84 = vst.msk [vmem:[#allocation4 + $0x30] sm:$0xff] %vm77_vm0, %v1502_v59  ;;  %85 = vst.msk [vmem:[#allocation4 + $0x38] sm:$0xff] %vm77_vm0, %v1502_v59  ;;  %v117_v23 = vld [vmem:[#allocation10] sm:$0xff]  ;;  %v118_v24 = vld [vmem:[#allocation10 + $0x8] sm:$0xff] }
  0x49   :  { %1265 = vmatmul.mubr.msk.f32.vlgmr.msra.gmra.mrb[2].mxu0 %vm77_vm0, %v106_v27  ;;  %v1326_v27 = vpack.c.bf16 %v118_v24, %v117_v23 }
  0x4a   :  { %1272 = vmatmul.mubr.msk.f32.vlgmr.msra.gmra.mrb[2].mxu1 %vm77_vm0, %v108_v28 }
  0x4b   :  { %1327 = vmatprep.subr.bf16.mxu0 %v1326_v27  ;;  %1333 = vmatpush3.bf16.msra.mxu1 %v1330_v33 }
  0x4c   :  { %1329 = vmatpush3.bf16.msra.mxu0 %v1326_v27 }
 0x114   :  { %v1252_v34 = vpop.f32.mrb[0].mxu0 }
 0x115   :  { %v1615_v35 = vsel %vm485_vm3, %v1252_v34, -1e+30  ;;  %v204_v36 = vpop.f32.mrb[1].mxu0  ;;  %v1259_v37 = vpop.f32.mrb[0].mxu1  ;;  %v121_v34 = vld [vmem:[#allocation10 + $0x20] sm:$0xff] }
 0x116   :  { %v1618_v38 = vsel %vm484_vm4, %v204_v36, -1e+30  ;;  %v1621_v39 = vsel %vm485_vm3, %v1259_v37, -1e+30  ;;  %v510_v40 = vsel %vm506_vm5, %v1615_v35, -inf  ;;  %v291_v41 = vpop.f32.mrb[1].mxu1 }
 0x117   :  { %511 = vmax.xlane.f32.xlu1 %v510_v40  ;;  %v1626_v42 = vsel %vm484_vm4, %v291_v41, -1e+30  ;;  %v507_v43 = vsel %vm506_vm5, %v1618_v38, -inf  ;;  %v516_v44 = vsel %vm506_vm5, %v1621_v39, -inf  ;;  %v122_v36 = vld [vmem:[#allocation10 + $0x28] sm:$0xff]  ;;  %v123_v40 = vld [vmem:[#allocation10 + $0x30] sm:$0xff] }
 0x118   :  { %508 = vmax.xlane.f32.xlu0 %v507_v43  ;;  %v513_v45 = vsel %vm506_vm5, %v1626_v42, -inf  ;;  %v1334_v37 = vpack.c.bf16 %v122_v36, %v121_v34  ;;  %v124_v41 = vld [vmem:[#allocation10 + $0x38] sm:$0xff] }
 0x119   :  { %v1338_v43 = vpack.c.bf16 %v124_v41, %v123_v40 }
 0x11a   :  { %1335 = vmatprep.subr.bf16.mxu0 %v1334_v37 }
 0x11b   :  { %517 = vmax.xlane.f32.xlu1 %v516_v44  ;;  %1339 = vmatprep.subr.bf16.mxu1 %v1338_v43 }
 0x11c   :  { %514 = vmax.xlane.f32.xlu0 %v513_v45  ;;  %v1266_v46 = vpop.f32.mrb[2].mxu0 }
 0x11d   :  { %v378_v47 = vpop.f32.mrb[3].mxu0  ;;  %v1273_v48 = vpop.f32.mrb[2].mxu1  ;;  %v1646_v54 = vsel %vm485_vm3, %v1266_v46, -1e+30 }
 0x11e   :  { %v1635_v49 = vsel %vm484_vm4, %v378_v47, -1e+30  ;;  %v465_v50 = vpop.f32.mrb[3].mxu1  ;;  %v1640_v52 = vsel %vm485_vm3, %v1273_v48, -1e+30  ;;  %v522_v57 = vsel %vm506_vm5, %v1646_v54, -inf }
 0x11f   :  { %v519_v51 = vsel %vm506_vm5, %v1635_v49, -inf  ;;  %v1643_v53 = vsel %vm484_vm4, %v465_v50, -1e+30  ;;  %v528_v56 = vsel %vm506_vm5, %v1640_v52, -inf }
 0x120   :  { %520 = vmax.xlane.f32.xlu0 %v519_v51  ;;  %v525_v55 = vsel %vm506_vm5, %v1643_v53, -inf }
 0x121   :  { %526 = vmax.xlane.f32.xlu1 %v525_v55 }
 0x124   :  { %523 = vmax.xlane.f32.xlu0 %v522_v57 }
 0x125   :  { %529 = vmax.xlane.f32.xlu1 %v528_v56 }
 0x1a4   :  { %v512_v62 = vpop.xlane.xlu1 %511 }
 0x1a5   :  { %v1675_v63 = vmax.f32 %v1670_v60, %v512_v62  ;;  %v509_v0 = vpop.xlane.xlu0 %508 }
 0x1a6   :  { %v1678_v1 = vmax.f32 %v1672_v61, %v509_v0 }
 0x1a7   :  { %v540_v3 = vsub.f32 %v1670_v60, %v1675_v63  ;;  %1081 = vst.msk [vmem:[#allocation2 + $0x8] sm:$0xff] %vm60_vm2, %v1675_v63  ;;  %570 = vperm.xlu1 %1352, %v1675_v63  }
 0x1a8   :  { %v539_v5 = vsub.f32 %v1672_v61, %v1678_v1  ;;  %1080 = vst.msk [vmem:[#allocation2] sm:$0xff] %vm60_vm2, %v1678_v1  ;;  %v518_v6 = vpop.xlane.xlu1 %517  ;;  %565 = vperm.xlu0 %1351, %v1678_v1  }
 0x1a9   :  { %v1695_v7 = vmax.f32 %v1680_v2, %v518_v6  ;;  %v515_v8 = vpop.xlane.xlu0 %514 }
 0x1aa   :  { %v1698_v9 = vmax.f32 %v1687_v4, %v515_v8 }
 0x1ab   :  { %v542_v10 = vsub.f32 %v1680_v2, %v1695_v7  ;;  %1083 = vst.msk [vmem:[#allocation2 + $0x18] sm:$0xff] %vm60_vm2, %v1695_v7  ;;  %580 = vperm.xlu1 %1352, %v1695_v7  }
 0x1ac   :  { %v541_v12 = vsub.f32 %v1687_v4, %v1698_v9  ;;  %1082 = vst.msk [vmem:[#allocation2 + $0x10] sm:$0xff] %vm60_vm2, %v1698_v9 }
 0x1ad   :  { %v521_v14 = vpop.xlane.xlu0 %520 }
 0x1ae   :  { %v1714_v15 = vmax.f32 %v1705_v11, %v521_v14  ;;  %v527_v16 = vpop.xlane.xlu1 %526 }
 0x1af   :  { %575 = vperm.xlu1 %1352, %v1698_v9   ;;  %v1720_v18 = vmax.f32 %v1711_v13, %v527_v16 }
 0x1b0   :  { %v543_v19 = vsub.f32 %v1705_v11, %v1714_v15  ;;  %1084 = vst.msk [vmem:[#allocation2 + $0x20] sm:$0xff] %vm60_vm2, %v1714_v15 }
 0x1b1   :  { %v524_v21 = vpop.xlane.xlu0 %523  ;;  %v545_v22 = vsub.f32 %v1711_v13, %v1720_v18  ;;  %1086 = vst.msk [vmem:[#allocation2 + $0x30] sm:$0xff] %vm60_vm2, %v1720_v18 }
 0x1b2   :  { %v1733_v25 = vmax.f32 %v1717_v17, %v524_v21  ;;  %v530_v26 = vpop.xlane.xlu1 %529  ;;  %v555_v60 = vmul.f32 1.442695, %v543_v19 }
 0x1b3   :  { %v1736_v28 = vmax.f32 %v1726_v20, %v530_v26  ;;  %v559_v63 = vmul.f32 1.442695, %v545_v22  ;;  %v629_v22 = vld [vmem:[#allocation3 + $0x10] sm:$0xff] }
 0x1b4   :  { %v544_v29 = vsub.f32 %v1717_v17, %v1733_v25  ;;  %1085 = vst.msk [vmem:[#allocation2 + $0x28] sm:$0xff] %vm60_vm2, %v1733_v25  ;;  %590 = vperm.xlu1 %1352, %v1733_v25   ;;  %v630_v17 = vld [vmem:[#allocation3 + $0x18] sm:$0xff] }
 0x1b5   :  { %v546_v30 = vsub.f32 %v1726_v20, %v1736_v28  ;;  %1087 = vst.msk [vmem:[#allocation2 + $0x38] sm:$0xff] %vm60_vm2, %v1736_v28 }
 0x1b6   :  { %v557_v61 = vmul.f32 1.442695, %v544_v29 }
 0x1b7   :  { %v561_v1 = vmul.f32 1.442695, %v546_v30 }
 0x1b8   :  { %585 = vperm.xlu1 %1352, %v1714_v15  }
 0x1bc   :  { %595 = vperm.xlu1 %1352, %v1720_v18  }
 0x1c0   :  { %600 = vperm.xlu1 %1352, %v1736_v28   ;;  %v627_v28 = vld [vmem:[#allocation3] sm:$0xff] }
 0x226   :  { %v571_v44 = vpop.permute.xlu1 %570 }
 0x227   :  { %v604_v45 = vsub.f32 %v1615_v35, %v571_v44  ;;  %v566_v46 = vpop.permute.xlu0 %565  ;;  %v549_v44 = vmul.f32 1.442695, %v540_v3 }
 0x228   :  { %v603_v47 = vsub.f32 %v1618_v38, %v566_v46  ;;  %v551_v46 = vmul.f32 1.442695, %v541_v12  ;;  %v628_v12 = vld [vmem:[#allocation3 + $0x8] sm:$0xff] }
 0x229   :  { %v613_v48 = vmul.f32 1.442695, %v604_v45  ;;  %v547_v45 = vmul.f32 1.442695, %v539_v5 }
 0x22a   :  { %v611_v50 = vmul.f32 1.442695, %v603_v47  ;;  %v581_v51 = vpop.permute.xlu1 %580  ;;  %v553_v47 = vmul.f32 1.442695, %v542_v10 }
 0x22b   :  { %1353 = vpow2.f32 %v613_v48  ;;  %v606_v55 = vsub.f32 %v1621_v39, %v581_v51 }
 0x22c   :  { %1355 = vpow2.f32 %v611_v50 }
 0x22d   :  { %v617_v56 = vmul.f32 1.442695, %v606_v55  ;;  %v632_v55 = vld [vmem:[#allocation3 + $0x28] sm:$0xff] }
 0x22e   :  { %v576_v57 = vpop.permute.xlu1 %575 }
 0x22f   :  { %1357 = vpow2.f32 %v617_v56  ;;  %v605_v58 = vsub.f32 %v1626_v42, %v576_v57 }
 0x231   :  { %v615_v59 = vmul.f32 1.442695, %v605_v58 }
 0x233   :  { %1359 = vpow2.f32 %v615_v59  ;;  %v591_v62 = vpop.permute.xlu1 %590 }
 0x234   :  { %v608_v35 = vsub.f32 %v1646_v54, %v591_v62  ;;  %v631_v62 = vld [vmem:[#allocation3 + $0x20] sm:$0xff] }
 0x235   :  { %v1354_v0 = vpop.eup %1353 }
 0x236   :  { %v1356_v6 = vpop.eup %1355  ;;  %v621_v38 = vmul.f32 1.442695, %v608_v35  ;;  %v646_v8 = vsel %vm506_vm5, %v1354_v0, 0.0 }
 0x237   :  { %v586_v14 = vpop.permute.xlu1 %585  ;;  %647 = vadd.xlane.f32.xlu0 %v646_v8  ;;  %1278 = vmatprep.mubr.msk.f32.mxu0 %vm506_vm5, %v1356_v6  ;;  %v643_v31 = vsel %vm506_vm5, %v1356_v6, 0.0  ;;  %v633_v8 = vld [vmem:[#allocation3 + $0x30] sm:$0xff] }
 0x238   :  { %1361 = vpow2.f32 %v621_v38  ;;  %v607_v39 = vsub.f32 %v1635_v49, %v586_v14  ;;  %1279 = vmatmul.mubr.msk.f32.vlgmr.msra.gmra.mrb[4].mxu0 %vm506_vm5, %v1354_v0 }
 0x239   :  { %v1358_v42 = vpop.eup %1357  ;;  %1337 = vmatpush3.bf16.msra.mxu0 %v1334_v37 }
 0x23a   :  { %v619_v16 = vmul.f32 1.442695, %v607_v39  ;;  %v652_v21 = vsel %vm506_vm5, %v1358_v42, 0.0 }
 0x23b   :  { %653 = vadd.xlane.f32.xlu1 %v652_v21  ;;  %v596_v54 = vpop.permute.xlu1 %595  ;;  %v634_v21 = vld [vmem:[#allocation3 + $0x38] sm:$0xff] }
 0x23c   :  { %1363 = vpow2.f32 %v619_v16  ;;  %v609_v23 = vsub.f32 %v1643_v53, %v596_v54 }
 0x23d   :  { %v1360_v24 = vpop.eup %1359 }
 0x23e   :  { %v623_v26 = vmul.f32 1.442695, %v609_v23  ;;  %1285 = vmatprep.mubr.msk.f32.mxu1 %vm506_vm5, %v1360_v24  ;;  %v649_v27 = vsel %vm506_vm5, %v1360_v24, 0.0 }
 0x23f   :  { %1286 = vmatmul.mubr.msk.f32.vlgmr.msra.gmra.mrb[4].mxu1 %vm506_vm5, %v1358_v42  ;;  %v601_v49 = vpop.permute.xlu1 %600  ;;  %650 = vadd.xlane.f32.xlu0 %v649_v27 }
 0x240   :  { %1365 = vpow2.f32 %v623_v26  ;;  %v610_v32 = vsub.f32 %v1640_v52, %v601_v49  ;;  %644 = vadd.xlane.f32.xlu1 %v643_v31  ;;  %1341 = vmatpush3.bf16.msra.mxu1 %v1338_v43 }
 0x242   :  { %v1362_v33 = vpop.eup %1361  ;;  %v625_v34 = vmul.f32 1.442695, %v610_v32 }
 0x243   :  { %v658_v53 = vsel %vm506_vm5, %v1362_v33, 0.0 }
 0x244   :  { %1367 = vpow2.f32 %v625_v34  ;;  %659 = vadd.xlane.f32.xlu1 %v658_v53  ;;  %v685_v34 = vld [vmem:[#allocation4 + $0x8] sm:$0xff] }
 0x245   :  { %1369 = vpow2.f32 %v549_v44 }
 0x246   :  { %v1364_v36 = vpop.eup %1363  ;;  %1371 = vpow2.f32 %v547_v45 }
 0x247   :  { %1292 = vmatprep.mubr.msk.f32.mxu0 %vm506_vm5, %v1364_v36  ;;  %v655_v37 = vsel %vm506_vm5, %v1364_v36, 0.0  ;;  %1373 = vpow2.f32 %v551_v46  ;;  %v684_v36 = vld [vmem:[#allocation4] sm:$0xff]  ;;  %v687_v46 = vld [vmem:[#allocation4 + $0x18] sm:$0xff] }
 0x248   :  { %656 = vadd.xlane.f32.xlu0 %v655_v37  ;;  %1293 = vmatmul.mubr.msk.f32.vlgmr.msra.gmra.mrb[6].mxu0 %vm506_vm5, %v1362_v33  ;;  %1375 = vpow2.f32 %v553_v47 }
 0x249   :  { %1377 = vpow2.f32 %v555_v60  ;;  %v686_v60 = vld [vmem:[#allocation4 + $0x10] sm:$0xff] }
 0x24a   :  { %v1366_v40 = vpop.eup %1365  ;;  %1379 = vpow2.f32 %v557_v61 }
 0x24b   :  { %1299 = vmatprep.mubr.msk.f32.mxu1 %vm506_vm5, %v1366_v40  ;;  %v661_v52 = vsel %vm506_vm5, %v1366_v40, 0.0  ;;  %1381 = vpow2.f32 %v559_v63 }
 0x24c   :  { %662 = vadd.xlane.f32.xlu0 %v661_v52  ;;  %1383 = vpow2.f32 %v561_v1 }
 0x24e   :  { %v1368_v41 = vpop.eup %1367 }
 0x24f   :  { %1300 = vmatmul.mubr.msk.f32.vlgmr.msra.gmra.mrb[6].mxu1 %vm506_vm5, %v1368_v41  ;;  %v664_v43 = vsel %vm506_vm5, %v1368_v41, 0.0  ;;  %v1370_v2 = vpop.eup %1369 }
 0x250   :  { %665 = vadd.xlane.f32.xlu1 %v664_v43  ;;  %v1372_v3 = vpop.eup %1371  ;;  %v636_v13 = vmul.f32 %v1370_v2, %v628_v12 }
 0x251   :  { %v1374_v4 = vpop.eup %1373  ;;  %v635_v30 = vmul.f32 %v1372_v3, %v627_v28 }
 0x252   :  { %v1376_v5 = vpop.eup %1375  ;;  %v637_v29 = vmul.f32 %v1374_v4, %v629_v22 }
 0x253   :  { %v1378_v7 = vpop.eup %1377  ;;  %v638_v19 = vmul.f32 %v1376_v5, %v630_v17 }
 0x254   :  { %v1380_v9 = vpop.eup %1379  ;;  %v639_v6 = vmul.f32 %v1378_v7, %v631_v62 }
 0x255   :  { %v1382_v10 = vpop.eup %1381  ;;  %v640_v58 = vmul.f32 %v1380_v9, %v632_v55 }
 0x256   :  { %v1384_v11 = vpop.eup %1383  ;;  %v641_v42 = vmul.f32 %v1382_v10, %v633_v8 }
 0x257   :  { %v642_v26 = vmul.f32 %v1384_v11, %v634_v21 }
 0x261   :  { %699 = vperm.xlu1 %1352, %v1370_v2  }
 0x262   :  { %694 = vperm.xlu0 %1351, %v1372_v3  }
 0x265   :  { %704 = vperm.xlu1 %1352, %v1374_v4  }
 0x266   :  { %709 = vperm.xlu0 %1351, %v1376_v5  }
 0x269   :  { %714 = vperm.xlu1 %1352, %v1378_v7   ;;  %v689_v7 = vld [vmem:[#allocation4 + $0x28] sm:$0xff] }
 0x26a   :  { %719 = vperm.xlu0 %1351, %v1380_v9  }
 0x26d   :  { %724 = vperm.xlu1 %1352, %v1382_v10   ;;  %v688_v10 = vld [vmem:[#allocation4 + $0x20] sm:$0xff] }
 0x26e   :  { %729 = vperm.xlu0 %1351, %v1384_v11  }
 0x2c4   :  { %v648_v15 = vpop.xlane.xlu0 %647 }
 0x2c5   :  { %v668_v18 = vadd.f32 %v648_v15, %v636_v13 }
 0x2c7   :  { %677 = vst.msk [vmem:[#allocation3 + $0x8] sm:$0xff] %vm60_vm2, %v668_v18 }
 0x2c8   :  { %v654_v20 = vpop.xlane.xlu1 %653 }
 0x2c9   :  { %v670_v25 = vadd.f32 %v654_v20, %v638_v19  ;;  %v691_v20 = vld [vmem:[#allocation4 + $0x38] sm:$0xff] }
 0x2cb   :  { %679 = vst.msk [vmem:[#allocation3 + $0x18] sm:$0xff] %vm60_vm2, %v670_v25  ;;  %v690_v25 = vld [vmem:[#allocation4 + $0x30] sm:$0xff] }
 0x2cc   :  { %v651_v48 = vpop.xlane.xlu0 %650 }
 0x2cd   :  { %v645_v50 = vpop.xlane.xlu1 %644  ;;  %v669_v51 = vadd.f32 %v651_v48, %v637_v29 }
 0x2ce   :  { %v667_v56 = vadd.f32 %v645_v50, %v635_v30  ;;  %v1100_v57 = vld [vmem:[#allocation3 + $0x8] sm:$0xff] }
 0x2cf   :  { %678 = vst.msk [vmem:[#allocation3 + $0x10] sm:$0xff] %vm60_vm2, %v669_v51  ;;  %1114 = vperm.xlu0 %1351, %v1100_v57  }
 0x2d0   :  { %676 = vst.msk [vmem:[#allocation3] sm:$0xff] %vm60_vm2, %v667_v56 }
 0x2d1   :  { %v660_v59 = vpop.xlane.xlu1 %659 }
 0x2d2   :  { %v672_v35 = vadd.f32 %v660_v59, %v640_v58  ;;  %v1102_v0 = vld [vmem:[#allocation3 + $0x18] sm:$0xff] }
 0x2d3   :  { %1124 = vperm.xlu0 %1351, %v1102_v0  }
 0x2d4   :  { %681 = vst.msk [vmem:[#allocation3 + $0x28] sm:$0xff] %vm60_vm2, %v672_v35 }
 0x2d5   :  { %v657_v38 = vpop.xlane.xlu0 %656 }
 0x2d6   :  { %v671_v14 = vadd.f32 %v657_v38, %v639_v6  ;;  %v1101_v23 = vld [vmem:[#allocation3 + $0x10] sm:$0xff] }
 0x2d7   :  { %v1099_v39 = vld [vmem:[#allocation3] sm:$0xff] }
 0x2d8   :  { %680 = vst.msk [vmem:[#allocation3 + $0x20] sm:$0xff] %vm60_vm2, %v671_v14  ;;  %1109 = vperm.xlu1 %1352, %v1099_v39  }
 0x2d9   :  { %v663_v16 = vpop.xlane.xlu0 %662 }
 0x2da   :  { %v673_v54 = vadd.f32 %v663_v16, %v641_v42 }
 0x2db   :  { %v1104_v24 = vld [vmem:[#allocation3 + $0x28] sm:$0xff] }
 0x2dc   :  { %682 = vst.msk [vmem:[#allocation3 + $0x30] sm:$0xff] %vm60_vm2, %v673_v54  ;;  %1119 = vperm.xlu1 %1352, %v1101_v23   ;;  %1134 = vperm.xlu0 %1351, %v1104_v24  }
 0x2dd   :  { %v666_v27 = vpop.xlane.xlu1 %665 }
 0x2de   :  { %v674_v49 = vadd.f32 %v666_v27, %v642_v26 }
 0x2df   :  { %v1103_v31 = vld [vmem:[#allocation3 + $0x20] sm:$0xff] }
 0x2e0   :  { %683 = vst.msk [vmem:[#allocation3 + $0x38] sm:$0xff] %vm60_vm2, %v674_v49  ;;  %1129 = vperm.xlu1 %1352, %v1103_v31  }
 0x2e1   :  { %v700_v53 = vpop.permute.xlu1 %699  ;;  %v695_v37 = vpop.permute.xlu0 %694 }
 0x2e2   :  { %v733_v40 = vmul.f32 %v700_v53, %v685_v34  ;;  %v732_v52 = vmul.f32 %v695_v37, %v684_v36 }
 0x2e3   :  { %v1105_v32 = vld [vmem:[#allocation3 + $0x30] sm:$0xff] }
 0x2e4   :  { %1139 = vperm.xlu1 %1352, %v1105_v32  }
 0x2e5   :  { %v710_v47 = vpop.permute.xlu0 %709  ;;  %v705_v61 = vpop.permute.xlu1 %704 }
 0x2e6   :  { %v735_v63 = vmul.f32 %v710_v47, %v687_v46  ;;  %v734_v1 = vmul.f32 %v705_v61, %v686_v60 }
 0x2e7   :  { %v1106_v33 = vld [vmem:[#allocation3 + $0x38] sm:$0xff] }
 0x2e8   :  { %1144 = vperm.xlu0 %1351, %v1106_v33  }
 0x2e9   :  { %v720_v9 = vpop.permute.xlu0 %719  ;;  %v715_v11 = vpop.permute.xlu1 %714 }
 0x2ea   :  { %v737_v12 = vmul.f32 %v720_v9, %v689_v7  ;;  %v736_v13 = vmul.f32 %v715_v11, %v688_v10 }
 0x2ed   :  { %v730_v22 = vpop.permute.xlu0 %729  ;;  %v725_v28 = vpop.permute.xlu1 %724 }
 0x2ee   :  { %v739_v29 = vmul.f32 %v730_v22, %v691_v20  ;;  %v738_v30 = vmul.f32 %v725_v28, %v690_v25 }
 0x30b   :  { %v1280_v41 = vpop.f32.mrb[4].mxu0 }
 0x30c   :  { %v1065_v43 = vadd.f32 %v1280_v41, %v733_v40  ;;  %v812_v44 = vpop.f32.mrb[5].mxu0 }
 0x30d   :  { %v1064_v45 = vadd.f32 %v812_v44, %v732_v52 }
 0x30e   :  { %1073 = vst.msk [vmem:[#allocation4 + $0x8] sm:$0xff] %vm77_vm0, %v1065_v43 }
 0x30f   :  { %1072 = vst.msk [vmem:[#allocation4] sm:$0xff] %vm77_vm0, %v1064_v45 }
 0x312   :  { %v1287_v2 = vpop.f32.mrb[4].mxu1 }
 0x313   :  { %v1067_v3 = vadd.f32 %v1287_v2, %v735_v63  ;;  %v893_v4 = vpop.f32.mrb[5].mxu1 }
 0x314   :  { %v1066_v5 = vadd.f32 %v893_v4, %v734_v1 }
 0x315   :  { %1075 = vst.msk [vmem:[#allocation4 + $0x18] sm:$0xff] %vm77_vm0, %v1067_v3  ;;  %v1092_v62 = vld [vmem:[#allocation4 + $0x8] sm:$0xff] }
 0x316   :  { %1074 = vst.msk [vmem:[#allocation4 + $0x10] sm:$0xff] %vm77_vm0, %v1066_v5  ;;  %v1091_v16 = vld [vmem:[#allocation4] sm:$0xff] }
 0x31b   :  { %v1294_v15 = vpop.f32.mrb[6].mxu0 }
 0x31c   :  { %v1069_v17 = vadd.f32 %v1294_v15, %v737_v12  ;;  %v974_v18 = vpop.f32.mrb[7].mxu0  ;;  %v1094_v8 = vld [vmem:[#allocation4 + $0x18] sm:$0xff] }
 0x31d   :  { %v1068_v19 = vadd.f32 %v974_v18, %v736_v13  ;;  %v1093_v24 = vld [vmem:[#allocation4 + $0x10] sm:$0xff] }
 0x31e   :  { %1077 = vst.msk [vmem:[#allocation4 + $0x28] sm:$0xff] %vm77_vm0, %v1069_v17 }
 0x31f   :  { %1076 = vst.msk [vmem:[#allocation4 + $0x20] sm:$0xff] %vm77_vm0, %v1068_v19 }
 0x322   :  { %v1301_v48 = vpop.f32.mrb[6].mxu1 }
 0x323   :  { %v1071_v50 = vadd.f32 %v1301_v48, %v739_v29  ;;  %v1055_v51 = vpop.f32.mrb[7].mxu1 }
 0x324   :  { %v1070_v55 = vadd.f32 %v1055_v51, %v738_v30 }
 0x325   :  { %1079 = vst.msk [vmem:[#allocation4 + $0x38] sm:$0xff] %vm77_vm0, %v1071_v50  ;;  %v1096_v49 = vld [vmem:[#allocation4 + $0x28] sm:$0xff] }
 0x326   :  { %1078 = vst.msk [vmem:[#allocation4 + $0x30] sm:$0xff] %vm77_vm0, %v1070_v55  ;;  %v1095_v34 = vld [vmem:[#allocation4 + $0x20] sm:$0xff] }
 0x32c   :  { %v1098_v41 = vld [vmem:[#allocation4 + $0x38] sm:$0xff] }
 0x32d   :  { %v1097_v37 = vld [vmem:[#allocation4 + $0x30] sm:$0xff] }
 0x34e   :  { %v1115_v56 = vpop.permute.xlu0 %1114 }
 0x34f   :  { %1385 = vrcp.f32 %v1115_v56 }
 0x352   :  { %v1125_v57 = vpop.permute.xlu0 %1124 }
 0x353   :  { %1387 = vrcp.f32 %v1125_v57 }
 0x357   :  { %v1110_v58 = vpop.permute.xlu1 %1109 }
 0x358   :  { %1389 = vrcp.f32 %v1110_v58 }
 0x359   :  { %v1386_v59 = vpop.eup %1385 }
 0x35a   :  { %v1150_v35 = vmul.f32 %v1386_v59, %v1092_v62 }
 0x35b   :  { %v1120_v0 = vpop.permute.xlu1 %1119  ;;  %v1135_v6 = vpop.permute.xlu0 %1134 }
 0x35c   :  { %1165 = vst.msk [vmem:[#allocation11 + $0x8] sm:$0xff] %vm77_vm0, %v1150_v35  ;;  %1391 = vrcp.f32 %v1120_v0 }
 0x35d   :  { %v1388_v38 = vpop.eup %1387  ;;  %1393 = vrcp.f32 %v1135_v6 }
 0x35e   :  { %v1154_v14 = vmul.f32 %v1388_v38, %v1094_v8 }
 0x35f   :  { %v1130_v39 = vpop.permute.xlu1 %1129 }
 0x360   :  { %1167 = vst.msk [vmem:[#allocation11 + $0x18] sm:$0xff] %vm77_vm0, %v1154_v14  ;;  %1395 = vrcp.f32 %v1130_v39 }
 0x362   :  { %v1390_v42 = vpop.eup %1389 }
 0x363   :  { %v1148_v21 = vmul.f32 %v1390_v42, %v1091_v16  ;;  %v1140_v54 = vpop.permute.xlu1 %1139 }
 0x364   :  { %1397 = vrcp.f32 %v1140_v54 }
 0x365   :  { %1164 = vst.msk [vmem:[#allocation11] sm:$0xff] %vm77_vm0, %v1148_v21 }
 0x366   :  { %v1392_v23 = vpop.eup %1391 }
 0x367   :  { %v1394_v26 = vpop.eup %1393  ;;  %v1152_v27 = vmul.f32 %v1392_v23, %v1093_v24  ;;  %v1145_v31 = vpop.permute.xlu0 %1144 }
 0x368   :  { %v1158_v32 = vmul.f32 %v1394_v26, %v1096_v49  ;;  %1399 = vrcp.f32 %v1145_v31 }
 0x369   :  { %1166 = vst.msk [vmem:[#allocation11 + $0x10] sm:$0xff] %vm77_vm0, %v1152_v27 }
 0x36a   :  { %v1396_v33 = vpop.eup %1395  ;;  %1169 = vst.msk [vmem:[#allocation11 + $0x28] sm:$0xff] %vm77_vm0, %v1158_v32 }
 0x36b   :  { %v1156_v53 = vmul.f32 %v1396_v33, %v1095_v34 }
 0x36d   :  { %1168 = vst.msk [vmem:[#allocation11 + $0x20] sm:$0xff] %vm77_vm0, %v1156_v53 }
 0x36e   :  { %v1398_v36 = vpop.eup %1397 }
 0x36f   :  { %v1160_v40 = vmul.f32 %v1398_v36, %v1097_v37 }
 0x371   :  { %1170 = vst.msk [vmem:[#allocation11 + $0x30] sm:$0xff] %vm77_vm0, %v1160_v40 }
 0x372   :  { %v1400_v52 = vpop.eup %1399 }
 0x373   :  { %v1162_v43 = vmul.f32 %v1400_v52, %v1098_v41 }
 0x375   :  { %1171 = vst.msk [vmem:[#allocation11 + $0x38] sm:$0xff] %vm77_vm0, %v1162_v43 }
 0x376   :  { %1478 = shalt.err (!%p1475_p0)
}
 0x377   :  { %s1479_s27 = scalar_lea.hbm %s1840_s3, 1024 }
 0x378   :  { %p1480_p1 = scmp.ne.s32.totalorder %s1840_s3, %s1479_s27  ;;  %p1483_p2 = scmp.lt.u32.totalorder %s1479_s27, %s1840_s3 }
 0x37a   :  { %p1485_p3 = pnand %p1483_p2, %p1480_p1 }
 0x37c   :  { %1488 = shalt.err (!%p1485_p3)
}
 0x37d   :  { %1183 = dma.vmem_to_hbm [thread:$0]  %s1178_s21, 1024, %s1840_s3, [#allocation7], %s1497_s24, %s1497_s24, %s1498_s25  }
 0x37e   :  { %1493 = dma.done.wait [#allocation7], 1024  }
 0x37f   :  { %1494 = vsyncadd [#allocation7], 4294966272 }
 0x380   :  { %1187 = vsyncpa [#allocation6], 1 }
 0x381   :  { %1188 = vsyncpa [#allocation9], 1 }
 0x382   :  { %1189 = vsyncpa [#allocation7], 1 }

</bundles_post_ra>
